<compile_context>
chip_gen: v5e
topology: v5e:2x2
jax: 0.10.0
libtpu: 0.0.40
codegen_flags: <defaults>
</compile_context>

<pallas_src>
import functools
import math

import jax
import jax.numpy as jnp
from jax.experimental import pallas as pl
from jax.experimental.pallas import tpu as pltpu


# ----------------------------- Pallas kernels ------------------------------ #

def _qkv_proj_kernel(xq_ref, xk_ref, xv_ref,
                     qw_ref, kw_ref, vw_ref,
                     qb_ref, kb_ref, vb_ref,
                     q_ref, k_ref, v_ref):
    # xq_ref: (T, E), xk_ref/xv_ref: (S, E); weights pre-transposed to (E, E);
    # biases (1, E).  One grid step = one batch element, three MXU matmuls.
    q_ref[...] = (jnp.dot(xq_ref[...], qw_ref[...],
                          preferred_element_type=jnp.float32) + qb_ref[...])
    k_ref[...] = (jnp.dot(xk_ref[...], kw_ref[...],
                          preferred_element_type=jnp.float32) + kb_ref[...])
    v_ref[...] = (jnp.dot(xv_ref[...], vw_ref[...],
                          preferred_element_type=jnp.float32) + vb_ref[...])


def qkv_projection(query, key, value, params):
    """Fused F.linear for q/k/v.  One pallas_call, grid=(B,)."""
    B, T, E = query.shape
    S = key.shape[1]
    # Parameter-setup glue: PyTorch stores W as (out, in); kernel wants (in, out).
    qw_t = jnp.transpose(params["q_w"])
    kw_t = jnp.transpose(params["k_w"])
    vw_t = jnp.transpose(params["v_w"])
    qb2 = params["q_b"].reshape(1, E)
    kb2 = params["k_b"].reshape(1, E)
    vb2 = params["v_b"].reshape(1, E)
    return pl.pallas_call(
        _qkv_proj_kernel,
        out_shape=(
            jax.ShapeDtypeStruct((B, T, E), jnp.float32),
            jax.ShapeDtypeStruct((B, S, E), jnp.float32),
            jax.ShapeDtypeStruct((B, S, E), jnp.float32),
        ),
        grid=(B,),
        in_specs=[
            pl.BlockSpec((pl.Squeezed(), T, E), lambda b: (b, 0, 0)),
            pl.BlockSpec((pl.Squeezed(), S, E), lambda b: (b, 0, 0)),
            pl.BlockSpec((pl.Squeezed(), S, E), lambda b: (b, 0, 0)),
            pl.BlockSpec((E, E), lambda b: (0, 0)),
            pl.BlockSpec((E, E), lambda b: (0, 0)),
            pl.BlockSpec((E, E), lambda b: (0, 0)),
            pl.BlockSpec((1, E), lambda b: (0, 0)),
            pl.BlockSpec((1, E), lambda b: (0, 0)),
            pl.BlockSpec((1, E), lambda b: (0, 0)),
        ],
        out_specs=(
            pl.BlockSpec((pl.Squeezed(), T, E), lambda b: (b, 0, 0)),
            pl.BlockSpec((pl.Squeezed(), S, E), lambda b: (b, 0, 0)),
            pl.BlockSpec((pl.Squeezed(), S, E), lambda b: (b, 0, 0)),
        ),
        # For large E, tile E_out and/or raise vmem_limit_bytes here
        # (pltpu.CompilerParams(vmem_limit_bytes=...)); unnecessary at these sizes.
        compiler_params=pltpu.CompilerParams(dimension_semantics=("parallel",)),
    )(query, key, value, qw_t, kw_t, vw_t, qb2, kb2, vb2)


def _attn_outproj_kernel(q_ref, k_ref, v_ref, ow_ref, ob_ref,
                         out_ref, wavg_ref, o2_scr,
                         *, num_heads, head_dim):
    # q_ref: (H, T, Dh), k_ref/v_ref: (H, S, Dh); ow_ref: (E, E) pre-transposed,
    # ob_ref: (1, E).  All heads handled inside one grid step (grid=(B,)).
    H = num_heads
    Dh = head_dim
    scale = 1.0 / math.sqrt(Dh)            # hoisted 1/sqrt(d_k)

    q3 = q_ref[...]
    k3 = k_ref[...]
    v3 = v_ref[...]

    # scaled dot-product scores for all heads at once (batched MXU matmul)
    scores = jnp.einsum("htd,hsd->hts", q3, k3,
                        preferred_element_type=jnp.float32) * scale

    # numerically-stable softmax over keys; reciprocal goes to the EUP slot
    m = jnp.max(scores, axis=-1, keepdims=True)
    e = jnp.exp(scores - m)
    denom = jnp.sum(e, axis=-1, keepdims=True)
    w = e * pl.reciprocal(denom, approx=False)

    # per-head attention output
    o3 = jnp.einsum("hts,hsd->htd", w, v3,
                    preferred_element_type=jnp.float32)   # (H, T, Dh)

    # permute(0,2,1,3).contiguous().view(B, T, E): head h occupies columns
    # [h*Dh, (h+1)*Dh) of the (T, E) matrix -- done with static column-slice
    # writes into a VMEM scratch (no host-side transpose, no HBM round trip).
    for h in range(H):
        o2_scr[:, h * Dh:(h + 1) * Dh] = o3[h]

    # fused output projection
    out_ref[...] = (jnp.dot(o2_scr[...], ow_ref[...],
                            preferred_element_type=jnp.float32) + ob_ref[...])

    # head-averaged attention weights (average_attn_weights=True)
    wavg_ref[...] = jnp.sum(w, axis=0) * (1.0 / H)


def attention_out_proj(q, k, v, out_w, out_b):
    """q: (B,H,T,Dh), k/v: (B,H,S,Dh) -> (out (B,T,E), head-avg weights (B,T,S))."""
    B, H, T, Dh = q.shape
    S = k.shape[2]
    E = H * Dh
    ow_t = jnp.transpose(out_w)            # (E, E)
    ob2 = out_b.reshape(1, E)
    kernel = functools.partial(_attn_outproj_kernel, num_heads=H, head_dim=Dh)
    return pl.pallas_call(
        kernel,
        out_shape=(
            jax.ShapeDtypeStruct((B, T, E), jnp.float32),
            jax.ShapeDtypeStruct((B, T, S), jnp.float32),
        ),
        grid=(B,),
        in_specs=[
            pl.BlockSpec((pl.Squeezed(), H, T, Dh), lambda b: (b, 0, 0, 0)),
            pl.BlockSpec((pl.Squeezed(), H, S, Dh), lambda b: (b, 0, 0, 0)),
            pl.BlockSpec((pl.Squeezed(), H, S, Dh), lambda b: (b, 0, 0, 0)),
            pl.BlockSpec((E, E), lambda b: (0, 0)),
            pl.BlockSpec((1, E), lambda b: (0, 0)),
        ],
        out_specs=(
            pl.BlockSpec((pl.Squeezed(), T, E), lambda b: (b, 0, 0)),
            pl.BlockSpec((pl.Squeezed(), T, S), lambda b: (b, 0, 0)),
        ),
        scratch_shapes=[pltpu.VMEM((T, E), jnp.float32)],
        compiler_params=pltpu.CompilerParams(dimension_semantics=("parallel",)),
    )(q, k, v, ow_t, ob2)


# --------------------------- Module forward pass ---------------------------- #

def multihead_attention(query, key, value, params, num_heads):
    """Forward pass of the PyTorch MultiheadAttention module.

    query: (B, T, E), key/value: (B, S, E). Returns (attn_output (B,T,E),
    attn_weights averaged over heads (B,T,S)) -- need_weights=True,
    average_attn_weights=True, no masks, dropout=0, batch_first=True.
    """
    B, T, E = query.shape
    S = key.shape[1]
    Dh = E // num_heads

    # Fused Q/K/V projections (one pallas_call).
    q, k, v = qkv_projection(query, key, value, params)

    # Replicate the module's raw `.view(B, H, L, Dh)` (NO transpose before view).
    q = q.reshape(B, num_heads, T, Dh)
    k = k.reshape(B, num_heads, S, Dh)
    v = v.reshape(B, num_heads, S, Dh)

    # Fused attention (all heads) + head averaging + output projection.
    out, attn_w_avg = attention_out_proj(q, k, v, params["out_w"], params["out_b"])
    return out, attn_w_avg


# ------------------------------ Param init ---------------------------------- #

def xavier_uniform(key, shape):
    fan_out, fan_in = shape
    bound = math.sqrt(6.0 / (fan_in + fan_out))
    return jax.random.uniform(key, shape, jnp.float32, -bound, bound)


def init_params(key, embed_dim):
    ks = jax.random.split(key, 4)
    E = embed_dim
    return {
        "q_w": xavier_uniform(ks[0], (E, E)),
        "k_w": xavier_uniform(ks[1], (E, E)),
        "v_w": xavier_uniform(ks[2], (E, E)),
        "q_b": jnp.zeros((E,), jnp.float32),
        "k_b": jnp.zeros((E,), jnp.float32),
        "v_b": jnp.zeros((E,), jnp.float32),
        "out_w": xavier_uniform(ks[3], (E, E)),
        "out_b": jnp.zeros((E,), jnp.float32),
    }


# ------------------------------- Reference ---------------------------------- #

def reference(query, key, value, params, num_heads):
    B, T, E = query.shape
    S = key.shape[1]
    Dh = E // num_heads
    q = query @ params["q_w"].T + params["q_b"]
    k = key @ params["k_w"].T + params["k_b"]
    v = value @ params["v_w"].T + params["v_b"]
    q = q.reshape(B, num_heads, T, Dh)
    k = k.reshape(B, num_heads, S, Dh)
    v = v.reshape(B, num_heads, S, Dh)
    s = jnp.einsum("bhtd,bhsd->bhts", q, k) / jnp.sqrt(jnp.float32(Dh))
    w = jax.nn.softmax(s, axis=-1)
    o = jnp.einsum("bhts,bhsd->bhtd", w, v)
    o = o.transpose(0, 2, 1, 3).reshape(B, T, E)
    out = o @ params["out_w"].T + params["out_b"]
    return out, w.mean(axis=1)


# --------------------------------- Main -------------------------------------- #

if __name__ == "__main__":
    B, T, S, E, H = 2, 8, 16, 32, 4

    root = jax.random.PRNGKey(0)
    kq, kk, kv, kp = jax.random.split(root, 4)
    query = jax.random.normal(kq, (B, T, E), jnp.float32)
    key_in = jax.random.normal(kk, (B, S, E), jnp.float32)
    value = jax.random.normal(kv, (B, S, E), jnp.float32)
    params = init_params(kp, E)

    out, attn_w = multihead_attention(query, key_in, value, params, H)
    out = jax.block_until_ready(out)
    attn_w = jax.block_until_ready(attn_w)

    ref_out, ref_w = reference(query, key_in, value, params, H)
    assert out.shape == (B, T, E) and attn_w.shape == (B, T, S)
    assert jnp.allclose(out, ref_out, atol=1e-4, rtol=1e-4)
    assert jnp.allclose(attn_w, ref_w, atol=1e-5, rtol=1e-5)

    print("KERNEL_OK")
</pallas_src>

<mosaic_0001>
module attributes {stable_mosaic.version = 11 : i64} {
  func.func @_qkv_proj_kernel(%arg0: i32, %arg1: memref<1x8x32xf32, #tpu.memory_space<vmem>>, %arg2: memref<1x16x32xf32, #tpu.memory_space<vmem>>, %arg3: memref<1x16x32xf32, #tpu.memory_space<vmem>>, %arg4: memref<32x32xf32, #tpu.memory_space<vmem>>, %arg5: memref<32x32xf32, #tpu.memory_space<vmem>>, %arg6: memref<32x32xf32, #tpu.memory_space<vmem>>, %arg7: memref<1x32xf32, #tpu.memory_space<vmem>>, %arg8: memref<1x32xf32, #tpu.memory_space<vmem>>, %arg9: memref<1x32xf32, #tpu.memory_space<vmem>>, %arg10: memref<1x8x32xf32, #tpu.memory_space<vmem>>, %arg11: memref<1x16x32xf32, #tpu.memory_space<vmem>>, %arg12: memref<1x16x32xf32, #tpu.memory_space<vmem>>) attributes {dimension_semantics = [#tpu.dimension_semantics<parallel>], iteration_bounds = array<i64: 2>, scalar_prefetch = 0 : i64, scratch_operands = 0 : i64, tpu.core_type = #tpu.core_type<tc>, window_params = [{transform_indices = @transform_0, window_bounds = array<i64: 1, 8, 32>}, {transform_indices = @transform_1, window_bounds = array<i64: 1, 16, 32>}, {transform_indices = @transform_2, window_bounds = array<i64: 1, 16, 32>}, {pipeline_mode = #tpu.pipeline_mode<synchronous>, transform_indices = @transform_3, window_bounds = array<i64: 32, 32>}, {pipeline_mode = #tpu.pipeline_mode<synchronous>, transform_indices = @transform_4, window_bounds = array<i64: 32, 32>}, {pipeline_mode = #tpu.pipeline_mode<synchronous>, transform_indices = @transform_5, window_bounds = array<i64: 32, 32>}, {pipeline_mode = #tpu.pipeline_mode<synchronous>, transform_indices = @transform_6, window_bounds = array<i64: 1, 32>}, {pipeline_mode = #tpu.pipeline_mode<synchronous>, transform_indices = @transform_7, window_bounds = array<i64: 1, 32>}, {pipeline_mode = #tpu.pipeline_mode<synchronous>, transform_indices = @transform_8, window_bounds = array<i64: 1, 32>}, {transform_indices = @transform_9, window_bounds = array<i64: 1, 8, 32>}, {transform_indices = @transform_10, window_bounds = array<i64: 1, 16, 32>}, {transform_indices = @transform_11, window_bounds = array<i64: 1, 16, 32>}]} {
    %c0 = arith.constant 0 : index
    %c0_0 = arith.constant 0 : index
    %c0_1 = arith.constant 0 : index
    %0 = vector.load %arg1[%c0, %c0_0, %c0_1] : memref<1x8x32xf32, #tpu.memory_space<vmem>>, vector<1x8x32xf32>
    %1 = vector.shape_cast %0 : vector<1x8x32xf32> to vector<8x32xf32>
    %c0_2 = arith.constant 0 : index
    %c0_3 = arith.constant 0 : index
    %2 = vector.load %arg4[%c0_2, %c0_3] : memref<32x32xf32, #tpu.memory_space<vmem>>, vector<32x32xf32>
    %cst = arith.constant dense<0.000000e+00> : vector<8x32xf32>
    %3 = tpu.matmul %1, %2, %cst {dimension_numbers = #tpu.dot_dimension_numbers<[1], [0], [0], [1], [0, 0, 1, 1], [], []>} : vector<8x32xf32>, vector<32x32xf32>, vector<8x32xf32> -> vector<8x32xf32>
    %c0_4 = arith.constant 0 : index
    %c0_5 = arith.constant 0 : index
    %4 = vector.load %arg7[%c0_4, %c0_5] : memref<1x32xf32, #tpu.memory_space<vmem>>, vector<1x32xf32>
    %5 = vector.broadcast %4 : vector<1x32xf32> to vector<8x32xf32>
    %6 = arith.addf %3, %5 : vector<8x32xf32>
    %c0_6 = arith.constant 0 : index
    %c0_7 = arith.constant 0 : index
    %c0_8 = arith.constant 0 : index
    %7 = vector.load %arg10[%c0_6, %c0_7, %c0_8] : memref<1x8x32xf32, #tpu.memory_space<vmem>>, vector<1x8x32xf32>
    %8 = vector.shape_cast %7 : vector<1x8x32xf32> to vector<8x32xf32>
    %9 = vector.shape_cast %6 : vector<8x32xf32> to vector<1x8x32xf32>
    tpu.vector_store %arg10[%c0_6, %c0_7, %c0_8], %9 {strides = array<i32>} : memref<1x8x32xf32, #tpu.memory_space<vmem>>, vector<1x8x32xf32>,
    %c0_9 = arith.constant 0 : index
    %c0_10 = arith.constant 0 : index
    %c0_11 = arith.constant 0 : index
    %10 = vector.load %arg2[%c0_9, %c0_10, %c0_11] : memref<1x16x32xf32, #tpu.memory_space<vmem>>, vector<1x16x32xf32>
    %11 = vector.shape_cast %10 : vector<1x16x32xf32> to vector<16x32xf32>
    %c0_12 = arith.constant 0 : index
    %c0_13 = arith.constant 0 : index
    %12 = vector.load %arg5[%c0_12, %c0_13] : memref<32x32xf32, #tpu.memory_space<vmem>>, vector<32x32xf32>
    %cst_14 = arith.constant dense<0.000000e+00> : vector<16x32xf32>
    %13 = tpu.matmul %11, %12, %cst_14 {dimension_numbers = #tpu.dot_dimension_numbers<[1], [0], [0], [1], [0, 0, 1, 1], [], []>} : vector<16x32xf32>, vector<32x32xf32>, vector<16x32xf32> -> vector<16x32xf32>
    %c0_15 = arith.constant 0 : index
    %c0_16 = arith.constant 0 : index
    %14 = vector.load %arg8[%c0_15, %c0_16] : memref<1x32xf32, #tpu.memory_space<vmem>>, vector<1x32xf32>
    %15 = vector.broadcast %14 : vector<1x32xf32> to vector<16x32xf32>
    %16 = arith.addf %13, %15 : vector<16x32xf32>
    %c0_17 = arith.constant 0 : index
    %c0_18 = arith.constant 0 : index
    %c0_19 = arith.constant 0 : index
    %17 = vector.load %arg11[%c0_17, %c0_18, %c0_19] : memref<1x16x32xf32, #tpu.memory_space<vmem>>, vector<1x16x32xf32>
    %18 = vector.shape_cast %17 : vector<1x16x32xf32> to vector<16x32xf32>
    %19 = vector.shape_cast %16 : vector<16x32xf32> to vector<1x16x32xf32>
    tpu.vector_store %arg11[%c0_17, %c0_18, %c0_19], %19 {strides = array<i32>} : memref<1x16x32xf32, #tpu.memory_space<vmem>>, vector<1x16x32xf32>,
    %c0_20 = arith.constant 0 : index
    %c0_21 = arith.constant 0 : index
    %c0_22 = arith.constant 0 : index
    %20 = vector.load %arg3[%c0_20, %c0_21, %c0_22] : memref<1x16x32xf32, #tpu.memory_space<vmem>>, vector<1x16x32xf32>
    %21 = vector.shape_cast %20 : vector<1x16x32xf32> to vector<16x32xf32>
    %c0_23 = arith.constant 0 : index
    %c0_24 = arith.constant 0 : index
    %22 = vector.load %arg6[%c0_23, %c0_24] : memref<32x32xf32, #tpu.memory_space<vmem>>, vector<32x32xf32>
    %cst_25 = arith.constant dense<0.000000e+00> : vector<16x32xf32>
    %23 = tpu.matmul %21, %22, %cst_25 {dimension_numbers = #tpu.dot_dimension_numbers<[1], [0], [0], [1], [0, 0, 1, 1], [], []>} : vector<16x32xf32>, vector<32x32xf32>, vector<16x32xf32> -> vector<16x32xf32>
    %c0_26 = arith.constant 0 : index
    %c0_27 = arith.constant 0 : index
    %24 = vector.load %arg9[%c0_26, %c0_27] : memref<1x32xf32, #tpu.memory_space<vmem>>, vector<1x32xf32>
    %25 = vector.broadcast %24 : vector<1x32xf32> to vector<16x32xf32>
    %26 = arith.addf %23, %25 : vector<16x32xf32>
    %c0_28 = arith.constant 0 : index
    %c0_29 = arith.constant 0 : index
    %c0_30 = arith.constant 0 : index
    %27 = vector.load %arg12[%c0_28, %c0_29, %c0_30] : memref<1x16x32xf32, #tpu.memory_space<vmem>>, vector<1x16x32xf32>
    %28 = vector.shape_cast %27 : vector<1x16x32xf32> to vector<16x32xf32>
    %29 = vector.shape_cast %26 : vector<16x32xf32> to vector<1x16x32xf32>
    tpu.vector_store %arg12[%c0_28, %c0_29, %c0_30], %29 {strides = array<i32>} : memref<1x16x32xf32, #tpu.memory_space<vmem>>, vector<1x16x32xf32>,
    return
  }
  func.func @transform_0(%arg0: i32) -> (i32, i32, i32) {
    %c0_i32 = arith.constant 0 : i32
    %c0_i32_0 = arith.constant 0 : i32
    %c0_i32_1 = arith.constant 0 : i32
    return %arg0, %c0_i32, %c0_i32_0 : i32, i32, i32
  }
  func.func @transform_1(%arg0: i32) -> (i32, i32, i32) {
    %c0_i32 = arith.constant 0 : i32
    %c0_i32_0 = arith.constant 0 : i32
    %c0_i32_1 = arith.constant 0 : i32
    return %arg0, %c0_i32, %c0_i32_0 : i32, i32, i32
  }
  func.func @transform_2(%arg0: i32) -> (i32, i32, i32) {
    %c0_i32 = arith.constant 0 : i32
    %c0_i32_0 = arith.constant 0 : i32
    %c0_i32_1 = arith.constant 0 : i32
    return %arg0, %c0_i32, %c0_i32_0 : i32, i32, i32
  }
  func.func @transform_3(%arg0: i32) -> (i32, i32) {
    %c0_i32 = arith.constant 0 : i32
    %c0_i32_0 = arith.constant 0 : i32
    %c0_i32_1 = arith.constant 0 : i32
    return %c0_i32, %c0_i32_0 : i32, i32
  }
  func.func @transform_4(%arg0: i32) -> (i32, i32) {
    %c0_i32 = arith.constant 0 : i32
    %c0_i32_0 = arith.constant 0 : i32
    %c0_i32_1 = arith.constant 0 : i32
    return %c0_i32, %c0_i32_0 : i32, i32
  }
  func.func @transform_5(%arg0: i32) -> (i32, i32) {
    %c0_i32 = arith.constant 0 : i32
    %c0_i32_0 = arith.constant 0 : i32
    %c0_i32_1 = arith.constant 0 : i32
    return %c0_i32, %c0_i32_0 : i32, i32
  }
  func.func @transform_6(%arg0: i32) -> (i32, i32) {
    %c0_i32 = arith.constant 0 : i32
    %c0_i32_0 = arith.constant 0 : i32
    %c0_i32_1 = arith.constant 0 : i32
    return %c0_i32, %c0_i32_0 : i32, i32
  }
  func.func @transform_7(%arg0: i32) -> (i32, i32) {
    %c0_i32 = arith.constant 0 : i32
    %c0_i32_0 = arith.constant 0 : i32
    %c0_i32_1 = arith.constant 0 : i32
    return %c0_i32, %c0_i32_0 : i32, i32
  }
  func.func @transform_8(%arg0: i32) -> (i32, i32) {
    %c0_i32 = arith.constant 0 : i32
    %c0_i32_0 = arith.constant 0 : i32
    %c0_i32_1 = arith.constant 0 : i32
    return %c0_i32, %c0_i32_0 : i32, i32
  }
  func.func @transform_9(%arg0: i32) -> (i32, i32, i32) {
    %c0_i32 = arith.constant 0 : i32
    %c0_i32_0 = arith.constant 0 : i32
    %c0_i32_1 = arith.constant 0 : i32
    return %arg0, %c0_i32, %c0_i32_0 : i32, i32, i32
  }
  func.func @transform_10(%arg0: i32) -> (i32, i32, i32) {
    %c0_i32 = arith.constant 0 : i32
    %c0_i32_0 = arith.constant 0 : i32
    %c0_i32_1 = arith.constant 0 : i32
    return %arg0, %c0_i32, %c0_i32_0 : i32, i32, i32
  }
  func.func @transform_11(%arg0: i32) -> (i32, i32, i32) {
    %c0_i32 = arith.constant 0 : i32
    %c0_i32_0 = arith.constant 0 : i32
    %c0_i32_1 = arith.constant 0 : i32
    return %arg0, %c0_i32, %c0_i32_0 : i32, i32, i32
  }
}

</mosaic_0001>

<bundles_post_ra>
// kernel: tpu_custom_call.1
= control target key start
LH: loop header
LB: loop body
LE: loop exit
PB: predicated region body
PF: predicated region fallthrough
CT: control target
= control target key end

     0   :  { %s1795_s0 = inlined_call_operand.hbm [shape: f32[2,8,32], index: 0, kind: input, shape index: {}]   ;;  %s1796_s1 = inlined_call_operand.hbm [shape: f32[2,16,32], index: 1, kind: input, shape index: {}]   ;;  %s1797_s2 = inlined_call_operand.hbm [shape: f32[2,16,32], index: 2, kind: input, shape index: {}]   ;;  %s1798_s3 = inlined_call_operand.hbm [shape: f32[32,32], index: 3, kind: input, shape index: {}]   ;;  %s1799_s4 = inlined_call_operand.hbm [shape: f32[32,32], index: 4, kind: input, shape index: {}]   ;;  %s1800_s5 = inlined_call_operand.hbm [shape: f32[32,32], index: 5, kind: input, shape index: {}]   ;;  %s1801_s6 = inlined_call_operand.vmem [shape: f32[1,32], index: 6, kind: input, shape index: {}]   ;;  %s1802_s7 = inlined_call_operand.vmem [shape: f32[1,32], index: 7, kind: input, shape index: {}]   ;;  %s1803_s8 = inlined_call_operand.vmem [shape: f32[1,32], index: 8, kind: input, shape index: {}]   ;;  %s1804_s9 = inlined_call_operand.hbm [shape: f32[2,8,32], index: 9, kind: output, shape index: {0}]   ;;  %s1805_s10 = inlined_call_operand.hbm [shape: f32[2,16,32], index: 10, kind: output, shape index: {1}]   ;;  %s1806_s11 = inlined_call_operand.hbm [shape: f32[2,16,32], index: 11, kind: output, shape index: {2}]  }
   0x1   :  { %1822 = sst [smem:[#allocation29_spill]] %s1796_s1 }
   0x2   :  { %1823 = sst [smem:[#allocation30_spill]] %s1798_s3 }
   0x3   :  { %1824 = sst [smem:[#allocation31_spill]] %s1801_s6 }
   0x4   :  { %1825 = sst [smem:[#allocation32_spill]] %s1802_s7 }
   0x5   :  { %1826 = sst [smem:[#allocation33_spill]] %s1803_s8 }
   0x6   :  { %1827 = sst [smem:[#allocation34_spill]] %s1805_s10 }
   0x7   :  { %1828 = sst [smem:[#allocation35_spill]] %s1806_s11 }
   0x8   :  { %17 = vsyncpa [#allocation3], 0 }
   0x9   :  { %19 = vsyncpa [#allocation3 + $0x1], 0 }
   0xa   :  { %20 = vsyncpa [#allocation6], 0 }
   0xb   :  { %22 = vsyncpa [#allocation6 + $0x1], 0 }
   0xc   :  { %23 = vsyncpa [#allocation9], 0 }
   0xd   :  { %24 = vsyncpa [#allocation12], 0 }
   0xe   :  { %25 = vsyncpa [#allocation4], 0 }
   0xf   :  { %27 = vsyncpa [#allocation4 + $0x1], 0 }
  0x10   :  { %28 = vsyncpa [#allocation15], 0 }
  0x11   :  { %30 = vsyncpa [#allocation15 + $0x1], 0  ;;  %s1472_s17 = smov 0   ;;  %s1474_s18 = smov 0  }
  0x12   :  { %s1476_s19 = smov 0   ;;  %s1478_s20 = smov 0  }
  0x13 LB: > { %1829 = sst [smem:[#allocation23_spill]] %s1391_s17  ;;  %s1493_s21 = sadd.s32 4294967295, %s1403_s20   ;;  %s1403_s20 = sphi %s1478_s20, %s1859_s20   ;;  %s1399_s19 = sphi %s1476_s19, %s1861_s19   ;;  %s1395_s18 = sphi %s1474_s18, %s1863_s18   ;;  %s1391_s17 = sphi %s1472_s17, %s1862_s17  }
  0x14   : > { %1830 = sst [smem:[#allocation24_spill]] %s1399_s19  ;;  %s1807_s22 = sadd.s32 4294967294, %s1403_s20  }
  0x15   : > { %p56_p0 = scmp.ne.s32.totalorder %s1395_s18, %s1391_s17  ;;  %p1820_p1 = scmp.eq.s32.totalorder %s1493_s21, 0 }
  0x16   : > { %p258_p2 = scmp.eq.s32.totalorder %s1493_s21, 1  ;;  %p264_p3 = scmp.eq.s32.totalorder %s1807_s22, 1 }
  0x17   : > { %p1504_p4 = por %p1820_p1, %p56_p0  ;;  %p935_p5 = scmp.ge.s32.totalorder %s1403_s20, 1 }
  0x18   : > { %p1509_p6 = por %p264_p3, %p56_p0  ;;  %p323_p7 = scmp.lt.s32.totalorder %s1403_s20, 3 }
  0x19   : > { %s1834_s3 = sld [smem:[#allocation30_spill]]  ;;  %s1405_s29 = smov [#allocation8]  }
  0x1a   : > { %s1832_s24 = scalar_select %p1509_p6, 1, 0 }
  0x1b   : > { %p1517_p8 = pnand %p935_p5, %p323_p7  ;;  %s336_s30 = sshll.u32 %s1405_s29, 4  ;;  %s337_s30 = int_to_ptr.vmem [resolvable:$true] %s336_s30 }
  0x1c   : > { %1833 = sst [smem:[#allocation25_spill]] %s1832_s24  ;;  %s1531_s13 = sadd.s32 1, %s1403_s20  }
  0x1d   : > { %p1005_p9 = pneg %p1517_p8  ;;  %1837 = sst [smem:[#allocation26_spill]] %s1531_s13 }
  0x1e   : > { %s1808_s14 = smov 128   ;;  %s1810_s15 = smov 8  }
  0x1f   : > { %s334_s27 = sshll.u32 %s1834_s3, 4  ;;  %p1525_p10 = pnand %p1005_p9, %p1820_p1  ;;  %s335_s27 = int_to_ptr.hbm [resolvable:$true] %s334_s27 }
  0x20   : > { %s40_s16 = ssub.s32 %s1403_s20, %s1531_s13  ;;  %s43_s25 = sadd.s32 1, %s1399_s19 }
  0x21   : > { %1008 = dma.hbm_to_vmem [thread:$0]  (!%p1525_p10), %s335_s27, 512, %s337_s30, [#allocation9], %s1808_s14, %s1808_s14, %s1810_s15  }
  0x22   : > { %p41_p12 = scmp.eq.s32.totalorder %s40_s16, 0  ;;  %p50_p13 = scmp.ne.s32.totalorder %s1399_s19, %s1395_s18 }
  0x23   : > { %p51_p0 = scmp.eq.s32.totalorder %s1403_s20, 0  ;;  %p1038_p3 = scmp.lt.s32.totalorder %s1403_s20, 2 }
  0x24   : > { %s1546_s26 = scalar_select %p41_p12, %s1399_s19, %s43_s25  }
  0x25   : > { %p52_p5 = por %p51_p0, %p50_p13  ;;  %p1550_p7 = por %p258_p2, %p50_p13 }
  0x26   : > { %1838 = sst [smem:[#allocation27_spill]] %s1546_s26  ;;  %s1555_s22 = sand.u32 1, %s1399_s19  }
  0x27   : > { %s1839_s29 = scalar_select %p1550_p7, 1, 0 }
  0x28   : > { %s406_s3 = sand.u32 1, %s1403_s20   ;;  %p1558_p9 = pnand %p1038_p3, %p52_p5 }
  0x29   : > { %1840 = sst [smem:[#allocation28_spill]] %s1839_s29  ;;  %s942_s30 = sshll.u32 %s1555_s22, 4 }
  0x2a   : > { %s973_s16 = sshll.u32 %s1403_s20, 4  ;;  %s1842_s1 = sld [smem:[#allocation29_spill]] }
  0x2b   : > { %s410_s26 = scalar_lea.vmem [#allocation5], %s942_s30  ;;  %s1567_s19 = scalar_lea.sflag [#allocation6], %s406_s3 }
  0x2c   : > { %s418_s13 = sshll.u32 %s410_s26, 4  ;;  %p1119_p12 = pneg %p1558_p9  ;;  %s419_s13 = int_to_ptr.vmem [resolvable:$true] %s418_s13 }
  0x30   : > { %s415_s15 = scalar_lea.hbm %s1842_s1, %s973_s16  ;;  %s1122_s25 = scalar_lea.hbm %s1842_s1, 32 }
  0x31   : > { %s416_s24 = sshll.u32 %s415_s15, 4  ;;  %s417_s24 = int_to_ptr.hbm [resolvable:$true] %s416_s24 }
  0x32   : > { %s1115_s17 = sshra.s32 %s417_s24, 4  ;;  %s1116_s17 = int_to_ptr.hbm [resolvable:$true] %s1115_s17 }
  0x33   : > { %s1117_s11 = scalar_lea.hbm %s1116_s17, 16  ;;  %p1123_p3 = scmp.lt.s32.totalorder %s1116_s17, %s1842_s1 }
  0x34   : > { %p1118_p2 = scmp.ne.s32.totalorder %s1116_s17, %s1117_s11  ;;  %p1124_p5 = scmp.lt.s32.totalorder %s1122_s25, %s1117_s11 }
  0x36   : > { %p1120_p13 = pnand %p1119_p12, %p1118_p2  ;;  %p1125_p11 = por %p1124_p5, %p1123_p3 }
  0x38   : > { %p1121_p0 = pneg %p1120_p13 }
  0x3a   : > { %p1126_p1 = pnand %p1125_p11, %p1121_p0 }
  0x3c   : > { %1129 = shalt.err (!%p1126_p1)
}
  0x3d   : > { %s1843_s3 = smov 8   ;;  %s1844_s8 = smov 128  }
  0x3e   : > { %1021 = dma.hbm_to_vmem [thread:$0]  (!%p1558_p9), %s417_s24, 256, %s419_s13, %s1567_s19, %s1844_s8, %s1844_s8, %s1843_s3  }
  0x3f   : > { %s437_s29 = scalar_lea.hbm %s1797_s2, %s973_s16  ;;  %s432_s14 = scalar_lea.vmem [#allocation7], %s942_s30 }
  0x40   : > { %s440_s17 = sshll.u32 %s432_s14, 4  ;;  %s438_s11 = sshll.u32 %s437_s29, 4  ;;  %s1589_s17 = int_to_ptr.vmem [resolvable:$true] %s440_s17  ;;  %s1612_s11 = int_to_ptr.hbm [resolvable:$true] %s438_s11 }
  0x41   : > { %s348_s15 = sshll.u32 %s1799_s4, 4  ;;  %s1408_s1 = smov [#allocation10]   ;;  %s349_s15 = int_to_ptr.hbm [resolvable:$true] %s348_s15 }
  0x42   : > { %s350_s7 = sshll.u32 %s1408_s1, 4  ;;  %s362_s6 = sshll.u32 %s1800_s5, 4  ;;  %s351_s7 = int_to_ptr.vmem [resolvable:$true] %s350_s7  ;;  %s363_s6 = int_to_ptr.hbm [resolvable:$true] %s362_s6 }
  0x43   : > { %1011 = dma.hbm_to_vmem [thread:$0]  (!%p1525_p10), %s349_s15, 512, %s351_s7, [#allocation9], %s1844_s8, %s1844_s8, %s1843_s3  }
  0x44   : > { %s1409_s10 = smov [#allocation11]   ;;  %s940_s16 = sshll.u32 %s1555_s22, 3 }
  0x45   : > { %s364_s30 = sshll.u32 %s1409_s10, 4  ;;  %s941_s1 = sshll.u32 %s1403_s20, 3  ;;  %s365_s30 = int_to_ptr.vmem [resolvable:$true] %s364_s30 }
  0x46   : > { %1014 = dma.hbm_to_vmem [thread:$0]  (!%p1525_p10), %s363_s6, 512, %s365_s30, [#allocation12], %s1844_s8, %s1844_s8, %s1843_s3  }
  0x47   : > { %s391_s29 = scalar_lea.vmem [#allocation2], %s940_s16  ;;  %s395_s24 = scalar_lea.hbm %s1795_s0, %s941_s1 }
  0x48   : > { %s399_s14 = sshll.u32 %s391_s29, 4  ;;  %s397_s7 = sshll.u32 %s395_s24, 4  ;;  %s400_s14 = int_to_ptr.vmem [resolvable:$true] %s399_s14  ;;  %s398_s7 = int_to_ptr.hbm [resolvable:$true] %s397_s7 }
  0x49   : > { %s388_s15 = scalar_lea.sflag [#allocation3], %s1555_s22  ;;  %s1205_s13 = sshra.s32 %s398_s7, 4  ;;  %s1206_s13 = int_to_ptr.hbm [resolvable:$true] %s1205_s13 }
  0x4a   : > { %s1207_s12 = scalar_lea.hbm %s1206_s13, 8  ;;  %s1212_s30 = scalar_lea.hbm %s1795_s0, 16 }
  0x4b   : > { %p1208_p1 = scmp.ne.s32.totalorder %s1206_s13, %s1207_s12  ;;  %p1213_p2 = scmp.lt.s32.totalorder %s1206_s13, %s1795_s0 }
  0x4c   : > { %p1214_p13 = scmp.lt.s32.totalorder %s1212_s30, %s1207_s12 }
  0x4d   : > { %p1210_p10 = pnand %p1208_p1, %p1119_p12 }
  0x4e   : > { %p1215_p0 = por %p1214_p13, %p1213_p2 }
  0x4f   : > { %p1211_p11 = pneg %p1210_p10 }
  0x51   : > { %p1216_p3 = pnand %p1215_p0, %p1211_p11 }
  0x53   : > { %1219 = shalt.err (!%p1216_p3)
}
  0x54   : > { %1018 = dma.hbm_to_vmem [thread:$0]  (!%p1558_p9), %s398_s7, 128, %s400_s14, %s388_s15  }
  0x55   : > { %s1235_s22 = sshra.s32 %s1612_s11, 4  ;;  %s1242_s24 = scalar_lea.hbm %s1797_s2, 32  ;;  %s1236_s22 = int_to_ptr.hbm [resolvable:$true] %s1235_s22 }
  0x56   : > { %s1237_s29 = scalar_lea.hbm %s1236_s22, 16  ;;  %p1243_p11 = scmp.lt.s32.totalorder %s1236_s22, %s1797_s2 }
  0x57   : > { %p1238_p5 = scmp.ne.s32.totalorder %s1236_s22, %s1237_s29  ;;  %p1244_p2 = scmp.lt.s32.totalorder %s1242_s24, %s1237_s29 }
  0x59   : > { %p1240_p1 = pnand %p1238_p5, %p1119_p12  ;;  %p1245_p13 = por %p1244_p2, %p1243_p11 }
  0x5b   : > { %p1241_p10 = pneg %p1240_p1 }
  0x5d   : > { %p1246_p0 = pnand %p1245_p13, %p1241_p10 }
  0x5f   : > { %1249 = shalt.err (!%p1246_p0)
}
  0x60   : > { %1024 = dma.hbm_to_vmem [thread:$0]  (!%p1558_p9), %s1612_s11, 256, %s1589_s17, %s1567_s19, %s1844_s8, %s1844_s8, %s1843_s3  }
  0x61   : > { %452 = sbr.rel (%p1517_p8) target bundleno = 283 (0x11b), region = 56  ;;  %s1647_s14 = sand.u32 (!%p1517_p8), 1, %s1395_s18  }
  0x62   : > { %s949_s7 = sshll.u32 (!%p1517_p8), %s1647_s14, 3  ;;  %s455_s15 = scalar_lea.sflag (!%p1517_p8), [#allocation3], %s1647_s14 }
  0x63   : > { %s1653_s27 = scalar_lea.vmem (!%p1517_p8), [#allocation2], %s949_s7 }
  0x66   : > { %1366 = dma.done.wait (%p1504_p4), %s455_s15, 128  }
  0x67   : > { %1368 = vsyncadd (%p1504_p4), %s455_s15, 4294967168  ;;  %s464_s8 = sand.u32 1, %s1493_s21   ;;  %s1661_s19 = sshll.u32 %s1647_s14, 4 }
  0x68   : > { %s465_s28 = scalar_lea.sflag [#allocation6], %s464_s8  ;;  %s468_s3 = scalar_lea.vmem [#allocation5], %s1661_s19 }
  0x69   : > { %1370 = dma.done.wait (%p1504_p4), %s465_s28, 512  }
  0x6a   : > { %1372 = vsyncadd (%p1504_p4), %s465_s28, 4294966784  ;;  %s478_s17 = scalar_lea.vmem [#allocation7], %s1661_s19  ;;  %p1845_p8 = scmp.eq.s32.totalorder %s1493_s21, 0 }
  0x6c   : > { %1374 = dma.done.wait (%p1845_p8), [#allocation9], 1024   ;;  %p1846_p9 = pmov %p1845_p8 }
  0x6d   : > { %p1847_p12 = pmov %p1845_p8 }
  0x6e   : > { %1376 = vsyncadd (%p1846_p9), [#allocation9], 4294966272 }
  0x6f   : > { %1378 = dma.done.wait (%p1847_p12), [#allocation12], 512   ;;  %p1848_p3 = pmov %p1845_p8 }
  0x70   : > { %v633_v0 = vld [vmem:[#allocation11 + $0x18] sm:$0xff]  ;;  %v632_v1 = vld [vmem:[#allocation11 + $0x10] sm:$0xff]  ;;  %v631_v3 = vld [vmem:[#allocation11 + $0x8] sm:$0xff]  ;;  %vm562_vm0 = vcmask 261120   ;;  %s966_s23 = sshll.u32 %s1493_s21, 3  ;;  %s975_s11 = sshll.u32 %s1493_s21, 4 }
  0x71   : > { %1380 = vsyncadd (%p1848_p3), [#allocation12], 4294966784  ;;  %656 = vmatpush.msra.mxu2 %v633_v0  ;;  %v592_v2 = vld [vmem:[#allocation10 + $0x18] sm:$0xff]  ;;  %v591_v4 = vld [vmem:[#allocation10 + $0x10] sm:$0xff]  ;;  %s690_s30 = scalar_lea.hbm %s1804_s9, %s966_s23  ;;  %s1849_s22 = sld [smem:[#allocation32_spill]] }
  0x72   : > { %977 = vmatpush.msra.mxu3 %v592_v2  ;;  %615 = vmatpush.msra.mxu1 %v592_v2  ;;  %v590_v5 = vld [vmem:[#allocation10 + $0x8] sm:$0xff]  ;;  %v557_v6 = vld [vmem:[#allocation8 + $0x18] sm:$0xff]  ;;  %v630_v7 = vld [vmem:[#allocation11] sm:$0xff]  ;;  %s1850_s26 = sld [smem:[#allocation34_spill]]  ;;  %s1707_s13 = scalar_lea.vmem [#allocation14], %s1661_s19 }
  0x73   : > { %657 = vmatpush.msra.mxu2 %v632_v1  ;;  %v628_v8 = vld [vmem:[%s478_s17] sm:$0xff]  ;;  %578 = vmatpush.msra.mxu0 %v557_v6  ;;  %v588_v11 = vld [vmem:[%s468_s3 + $0x8] sm:$0xff]  ;;  %s706_s12 = sshll.u32 %s1707_s13, 4  ;;  %s1851_s28 = sld [smem:[#allocation31_spill]]  ;;  %s1718_s12 = int_to_ptr.vmem [resolvable:$true] %s706_s12 }
  0x74   : > { %978 = vmatpush.msra.mxu3 %v591_v4  ;;  %v556_v9 = vld [vmem:[#allocation8 + $0x10] sm:$0xff]  ;;  %v589_v10 = vld [vmem:[#allocation10] sm:$0xff]  ;;  %616 = vmatpush.msra.mxu1 %v591_v4  ;;  %v555_v12 = vld [vmem:[#allocation8 + $0x8] sm:$0xff]  ;;  %s694_s23 = sshll.u32 %s690_s30, 4  ;;  %s1852_s16 = sld [smem:[#allocation33_spill]]  ;;  %s695_s23 = int_to_ptr.hbm [resolvable:$true] %s694_s23 }
  0x75   : > { %658 = vmatpush.msra.mxu2 %v631_v3  ;;  %579 = vmatpush.msra.mxu0 %v556_v9  ;;  %v554_v13 = vld [vmem:[#allocation8] sm:$0xff]  ;;  %v553_v15 = vld [vmem:[%s1653_s27] sm:$0xff]  ;;  %s1279_s30 = sshra.s32 %s695_s23, 4  ;;  %s1285_s15 = scalar_lea.hbm %s1804_s9, 16  ;;  %s1280_s30 = int_to_ptr.hbm [resolvable:$true] %s1279_s30 }
  0x76   : > { %979 = vmatpush.msra.mxu3 %v590_v5  ;;  %617 = vmatpush.msra.mxu1 %v590_v5  ;;  %v587_v14 = vld [vmem:[%s468_s3] sm:$0xff]  ;;  %v629_v16 = vld [vmem:[%s478_s17 + $0x8] sm:$0xff]  ;;  %s538_s3 = scalar_lea.vmem [#allocation13], %s949_s7  ;;  %s670_s7 = scalar_lea.sflag [#allocation4], %s1647_s14 }
  0x77   : > { %659 = vmatpush.msra.mxu2 %v630_v7  ;;  %580 = vmatpush.msra.mxu0 %v555_v12  ;;  %v1083_v17 = vld [vmem:[%s1849_s22] ss:$0 sm:$0xff]  ;;  %s692_s17 = sshll.u32 %s538_s3, 4  ;;  %s1281_s29 = scalar_lea.hbm %s1280_s30, 8  ;;  %s693_s17 = int_to_ptr.vmem [resolvable:$true] %s692_s17 }
  0x78   : > { %961 = vmatmul.msk.f32.vlgmr.msra.gmra.mxu2 %vm562_vm0, %v628_v8  ;;  %980 = vmatpush.msra.mxu3 %v589_v10  ;;  %s705_s24 = scalar_lea.hbm %s1850_s26, %s975_s11  ;;  %p1282_p4 = scmp.ne.s32.totalorder %s1280_s30, %s1281_s29 }
  0x79   : > { %960 = vmatmul.msk.f32.vlgmr.msra.gmra.mxu3 %vm562_vm0, %v588_v11  ;;  %618 = vmatpush.msra.mxu1 %v589_v10  ;;  %v1084_v18 = vld [vmem:[%s1851_s28] ss:$0 sm:$0xff]  ;;  %s708_s1 = sshll.u32 %s705_s24, 4  ;;  %p1286_p10 = scmp.lt.s32.totalorder %s1280_s30, %s1804_s9  ;;  %s1722_s1 = int_to_ptr.hbm [resolvable:$true] %s708_s1 }
  0x7a   : > { %581 = vmatpush.msra.mxu0 %v554_v13  ;;  %959 = vmatmul.msk.f32.vlgmr.msra.gmra.mxu1 %vm562_vm0, %v587_v14  ;;  %v1082_v19 = vld [vmem:[%s1852_s16] ss:$0 sm:$0xff]  ;;  %p1283_p5 = pnand %p1282_p4, %p1550_p7  ;;  %p1287_p11 = scmp.lt.s32.totalorder %s1285_s15, %s1281_s29 }
  0x7b   : > { %958 = vmatmul.msk.f32.vlgmr.msra.gmra.mxu0 %vm562_vm0, %v553_v15 }
  0x7c   : > { %p1284_p1 = pneg %p1283_p5  ;;  %p1288_p2 = por %p1287_p11, %p1286_p10 }
  0x7e   : > { %p1289_p13 = pnand %p1288_p2, %p1284_p1 }
  0x80   : > { %962 = vmatmul.msk.f32.gmra.mxu2 %vm562_vm0, %v629_v16 }
  0xf7   : > { %v620_v20 = vpop.f32.mrf.mxu1 }
  0xf8   : > { %v621_v21 = vadd.f32 %v1083_v17, %v620_v20  ;;  %v583_v22 = vpop.f32.mrf.mxu0 }
  0xf9   : > { %v584_v23 = vadd.f32 %v1084_v18, %v583_v22 }
  0xfa   : > { %626 = vst.msk [vmem:[%s1707_s13] sm:$0xff] %vm562_vm0, %v621_v21 }
  0xfb   : > { %v661_v24 = vpop.f32.mrf.mxu2  ;;  %586 = vst.msk [vmem:[%s538_s3] sm:$0xff] %vm562_vm0, %v584_v23 }
  0xfc   : > { %v662_v25 = vadd.f32 %v1082_v19, %v661_v24  ;;  %v623_v26 = vpop.f32.mrf.mxu3 }
  0xfd   : > { %v624_v27 = vadd.f32 %v1083_v17, %v623_v26 }
  0xfe   : > { %1292 = shalt.err (!%p1289_p13)
}
  0xff   : > { %999 = dma.vmem_to_hbm [thread:$0]  (%p1550_p7), %s693_s17, 128, %s695_s23, %s670_s7   ;;  %627 = vst.msk [vmem:[%s1707_s13 + $0x8] sm:$0xff] %vm562_vm0, %v624_v27 }
 0x100   : > { %s552_s14 = scalar_lea.vmem [#allocation16], %s1661_s19  ;;  %s1854_s10 = sld [smem:[#allocation35_spill]] }
 0x101   : > { %667 = vst.msk [vmem:[%s552_s14] sm:$0xff] %vm562_vm0, %v662_v25  ;;  %s1747_s30 = scalar_lea.sflag [#allocation15], %s464_s8  ;;  %s1307_s29 = sshra.s32 %s1722_s1, 4  ;;  %s1308_s29 = int_to_ptr.hbm [resolvable:$true] %s1307_s29 }
 0x102   : > { %s1309_s25 = scalar_lea.hbm %s1308_s29, 16  ;;  %s1313_s23 = scalar_lea.hbm %s1850_s26, 32 }
 0x103   : > { %p1310_p0 = scmp.ne.s32.totalorder %s1308_s29, %s1309_s25  ;;  %p1314_p12 = scmp.lt.s32.totalorder %s1308_s29, %s1850_s26 }
 0x104   : > { %p1315_p3 = scmp.lt.s32.totalorder %s1313_s23, %s1309_s25 }
 0x105   : > { %p1311_p8 = pnand %p1310_p0, %p1550_p7 }
 0x106   : > { %s722_s16 = scalar_lea.hbm %s1854_s10, %s975_s11  ;;  %p1316_p4 = por %p1315_p3, %p1314_p12 }
 0x107   : > { %p1312_p9 = pneg %p1311_p8 }
 0x109   : > { %p1317_p5 = pnand %p1316_p4, %p1312_p9 }
 0x10b   : > { %1320 = shalt.err (!%p1317_p5)
}
 0x10c   : > { %s1410_s21 = smov 128   ;;  %s1411_s8 = smov 8   ;;  %v664_v28 = vpop.f32.mrf.mxu2 }
 0x10d   : > { %1000 = dma.vmem_to_hbm [thread:$0]  (%p1550_p7), %s1718_s12, 256, %s1722_s1, %s1747_s30, %s1410_s21, %s1410_s21, %s1411_s8   ;;  %v665_v29 = vadd.f32 %v1082_v19, %v664_v28 }
 0x10e   : > { %s723_s11 = sshll.u32 %s552_s14, 4  ;;  %s725_s13 = sshll.u32 %s722_s16, 4  ;;  %s724_s11 = int_to_ptr.vmem [resolvable:$true] %s723_s11  ;;  %s726_s13 = int_to_ptr.hbm [resolvable:$true] %s725_s13 }
 0x10f   : > { %668 = vst.msk [vmem:[%s552_s14 + $0x8] sm:$0xff] %vm562_vm0, %v665_v29  ;;  %s1335_s15 = sshra.s32 %s726_s13, 4  ;;  %s1341_s6 = scalar_lea.hbm %s1854_s10, 32  ;;  %s1336_s15 = int_to_ptr.hbm [resolvable:$true] %s1335_s15 }
 0x110   : > { %s1337_s27 = scalar_lea.hbm %s1336_s15, 16  ;;  %p1342_p2 = scmp.lt.s32.totalorder %s1336_s15, %s1854_s10 }
 0x111   : > { %p1338_p1 = scmp.ne.s32.totalorder %s1336_s15, %s1337_s27  ;;  %p1343_p13 = scmp.lt.s32.totalorder %s1341_s6, %s1337_s27 }
 0x113   : > { %p1339_p10 = pnand %p1338_p1, %p1550_p7  ;;  %p1344_p0 = por %p1343_p13, %p1342_p2 }
 0x115   : > { %p1340_p11 = pneg %p1339_p10 }
 0x117   : > { %p1345_p8 = pnand %p1344_p0, %p1340_p11 }
 0x119   : > { %1348 = shalt.err (!%p1345_p8)
}
 0x11a   : > { %1001 = dma.vmem_to_hbm [thread:$0]  (%p1550_p7), %s724_s11, 256, %s726_s13, %s1747_s30, %s1410_s21, %s1410_s21, %s1411_s8  }
 0x11b PF: > { %s1855_s14 = sld [smem:[#allocation23_spill]]  ;;  %p1857_p9 = scmp.ge.s32.totalorder %s1403_s20, 2 }
 0x11d   : > { %p1026_p12 = pnand %p1857_p9, %p1509_p6 }
 0x11f   : > { %p1027_p3 = pneg %p1026_p12 }
 0x121   : > { %s740_s29 = sand.u32 1, %s1855_s14  }
 0x122   : > { %s741_s25 = scalar_lea.sflag [#allocation4], %s740_s29 }
 0x123   : > { %1382 = dma.done.wait (%p1027_p3), %s741_s25, 128  }
 0x124   : > { %1384 = vsyncadd (%p1027_p3), %s741_s25, 4294967168  ;;  %s1858_s19 = sadd.s32 4294967294, %s1403_s20  }
 0x125   : > { %s750_s17 = sand.u32 1, %s1858_s19  }
 0x126   : > { %s751_s23 = scalar_lea.sflag [#allocation15], %s750_s17 }
 0x127   : > { %1386 = dma.done.wait (%p1027_p3), %s751_s23, 512  }
 0x128   : > { %1388 = vsyncadd (%p1027_p3), %s751_s23, 4294966784  ;;  %s1859_s20 = sld [smem:[#allocation26_spill]]  ;;  %s1862_s17 = smov %s1395_s18 }
 0x129   : > { %s1860_s22 = sld [smem:[#allocation24_spill]] }
 0x12a   : > { %s1861_s19 = sld [smem:[#allocation27_spill]] }
 0x12e   : > { %p33_p7 = scmp.ge.s32.totalorder %s1859_s20, 4  }
 0x12f   : > { %s1863_s18 = smov %s1860_s22 }
 0x130   :  { %35 = sbr.rel (!%p33_p7) target bundleno = 19 (0x13), region = 169 }
 0x135   :  { %767 = vsyncpa [#allocation3], 1 }
 0x136   :  { %769 = vsyncpa [#allocation3 + $0x1], 1 }
 0x137   :  { %770 = vsyncpa [#allocation6], 1 }
 0x138   :  { %772 = vsyncpa [#allocation6 + $0x1], 1 }
 0x139   :  { %773 = vsyncpa [#allocation9], 1 }
 0x13a   :  { %774 = vsyncpa [#allocation12], 1 }
 0x13b   :  { %775 = vsyncpa [#allocation4], 1 }
 0x13c   :  { %777 = vsyncpa [#allocation4 + $0x1], 1 }
 0x13d   :  { %778 = vsyncpa [#allocation15], 1 }
 0x13e   :  { %780 = vsyncpa [#allocation15 + $0x1], 1 }

</bundles_post_ra>
